<compile_context>
chip_gen: v5e
topology: v5e:2x2
jax: 0.10.0
libtpu: 0.0.40
codegen_flags: <defaults>
</compile_context>

<pallas_src>
import jax
import jax.numpy as jnp
from jax.experimental import pallas as pl
from jax.experimental.pallas import tpu as pltpu

# MLP architecture from HeadMLP.__init__ / forward
LAYER_DIMS = [256, 128, 64, 32, 16, 4, 4]               # fc1..fc6, fcout output dims
DROPOUT_PS = [0.1, 0.005, 0.001, 0.001, 0.001, 0.001]   # after fc1..fc6 (none after fcout)


def head_mlp_kernel(x_ref,
                    m1, m2, m3, m4, m5, m6,
                    w1, b1, w2, b2, w3, b3, w4, b4, w5, b5, w6, b6, w7, b7,
                    out_ref):
    def layer(h, w_ref, b_ref, m_ref):
        # bf16 MXU matmul, f32 accumulation; bias + ReLU + dropout mask in f32.
        h = jnp.dot(h.astype(w_ref.dtype), w_ref[...],
                    preferred_element_type=jnp.float32) + b_ref[...]
        h = jnp.maximum(h, 0.0)                 # ReLU
        return h * m_ref[...]                   # keep-mask 0/1; 1/(1-p) folded into next W

    h = x_ref[...].astype(jnp.float32)
    h = layer(h, w1, b1, m1)
    h = layer(h, w2, b2, m2)
    h = layer(h, w3, b3, m3)
    h = layer(h, w4, b4, m4)
    h = layer(h, w5, b5, m5)
    h = layer(h, w6, b6, m6)
    # fcout: plain linear, no ReLU / dropout
    out_ref[...] = (jnp.dot(h.astype(w7.dtype), w7[...],
                            preferred_element_type=jnp.float32)
                    + b7[...]).astype(out_ref.dtype)


def init_params(q_num, key, *, weight_dtype=jnp.bfloat16):
    """nn.Linear-style U(-1/sqrt(fan_in), 1/sqrt(fan_in)) init.

    Weights are stored as (in_dim, out_dim) so the kernel computes h @ W + b
    (== PyTorch x @ W.T + b). The inverted-dropout rescale 1/(1-p_i) of layer i
    is folded into W_{i+1} so the kernel's dropout is a bare 0/1 mask multiply.
    """
    ws, bs = [], []
    in_dim = q_num
    for out_dim in LAYER_DIMS:
        key, kw, kb = jax.random.split(key, 3)
        bound = 1.0 / (in_dim ** 0.5)
        ws.append(jax.random.uniform(kw, (in_dim, out_dim), jnp.float32, -bound, bound))
        bs.append(jax.random.uniform(kb, (1, out_dim), jnp.float32, -bound, bound))
        in_dim = out_dim
    for i, p in enumerate(DROPOUT_PS):
        ws[i + 1] = ws[i + 1] * jnp.float32(1.0 / (1.0 - p))
    params = []
    for w, b in zip(ws, bs):
        params += [w.astype(weight_dtype), b.astype(jnp.float32)]
    return params


def _round_up(x, m):
    return (x + m - 1) // m * m


def head_mlp_forward(x, params, dropout_key, *, tile_b=512):
    B, q_num = x.shape
    TB = min(tile_b, _round_up(B, 8))            # batch tile (multiple of 8 sublanes)
    Bp = _round_up(B, TB)
    if Bp != B:
        x = jnp.pad(x, ((0, Bp - B), (0, 0)))

    # Bernoulli keep-masks (1.0 = keep, 0.0 = drop); scale already folded into weights.
    keys = jax.random.split(dropout_key, len(DROPOUT_PS))
    masks = [jax.random.bernoulli(k, 1.0 - p, (Bp, d)).astype(jnp.float32)
             for k, p, d in zip(keys, DROPOUT_PS, LAYER_DIMS[:-1])]

    grid = (Bp // TB,)
    row_spec = lambda d: pl.BlockSpec((TB, d), lambda i: (i, 0))      # tiled over batch
    const_spec = lambda a: pl.BlockSpec(a.shape, lambda i: (0, 0))    # resident in VMEM

    in_specs = ([row_spec(q_num)] +
                [row_spec(d) for d in LAYER_DIMS[:-1]] +
                [const_spec(p) for p in params])

    out = pl.pallas_call(
        head_mlp_kernel,
        grid=grid,
        in_specs=in_specs,
        out_specs=row_spec(LAYER_DIMS[-1]),
        out_shape=jax.ShapeDtypeStruct((Bp, LAYER_DIMS[-1]), jnp.float32),
        compiler_params=pltpu.CompilerParams(
            dimension_semantics=("parallel",)),
    )(x, *masks, *params)
    return out[:B]


if __name__ == "__main__":
    q_num = 16   # number of input features (qubits)
    batch = 8

    root = jax.random.PRNGKey(0)
    kx, kparam, kdrop = jax.random.split(root, 3)
    x = jax.random.normal(kx, (batch, q_num), dtype=jnp.float32)
    params = init_params(q_num, kparam)

    out = head_mlp_forward(x, params, kdrop)
    out = jax.block_until_ready(out)
    assert out.shape == (batch, 4)
    assert bool(jnp.all(jnp.isfinite(out)))
    print("KERNEL_OK")
</pallas_src>

<mosaic_0001>
module attributes {stable_mosaic.version = 11 : i64} {
  func.func @head_mlp_kernel(%arg0: i32, %arg1: memref<8x16xf32, #tpu.memory_space<vmem>>, %arg2: memref<8x256xf32, #tpu.memory_space<vmem>>, %arg3: memref<8x128xf32, #tpu.memory_space<vmem>>, %arg4: memref<8x64xf32, #tpu.memory_space<vmem>>, %arg5: memref<8x32xf32, #tpu.memory_space<vmem>>, %arg6: memref<8x16xf32, #tpu.memory_space<vmem>>, %arg7: memref<8x4xf32, #tpu.memory_space<vmem>>, %arg8: memref<16x256xbf16, #tpu.memory_space<vmem>>, %arg9: memref<1x256xf32, #tpu.memory_space<vmem>>, %arg10: memref<256x128xbf16, #tpu.memory_space<vmem>>, %arg11: memref<1x128xf32, #tpu.memory_space<vmem>>, %arg12: memref<128x64xbf16, #tpu.memory_space<vmem>>, %arg13: memref<1x64xf32, #tpu.memory_space<vmem>>, %arg14: memref<64x32xbf16, #tpu.memory_space<vmem>>, %arg15: memref<1x32xf32, #tpu.memory_space<vmem>>, %arg16: memref<32x16xbf16, #tpu.memory_space<vmem>>, %arg17: memref<1x16xf32, #tpu.memory_space<vmem>>, %arg18: memref<16x4xbf16, #tpu.memory_space<vmem>>, %arg19: memref<1x4xf32, #tpu.memory_space<vmem>>, %arg20: memref<4x4xbf16, #tpu.memory_space<vmem>>, %arg21: memref<1x4xf32, #tpu.memory_space<vmem>>, %arg22: memref<8x4xf32, #tpu.memory_space<vmem>>) attributes {dimension_semantics = [#tpu.dimension_semantics<parallel>], iteration_bounds = array<i64: 1>, scalar_prefetch = 0 : i64, scratch_operands = 0 : i64, tpu.core_type = #tpu.core_type<tc>, window_params = [{transform_indices = @transform_0, window_bounds = array<i64: 8, 16>}, {transform_indices = @transform_1, window_bounds = array<i64: 8, 256>}, {transform_indices = @transform_2, window_bounds = array<i64: 8, 128>}, {transform_indices = @transform_3, window_bounds = array<i64: 8, 64>}, {transform_indices = @transform_4, window_bounds = array<i64: 8, 32>}, {transform_indices = @transform_5, window_bounds = array<i64: 8, 16>}, {transform_indices = @transform_6, window_bounds = array<i64: 8, 4>}, {pipeline_mode = #tpu.pipeline_mode<synchronous>, transform_indices = @transform_7, window_bounds = array<i64: 16, 256>}, {pipeline_mode = #tpu.pipeline_mode<synchronous>, transform_indices = @transform_8, window_bounds = array<i64: 1, 256>}, {pipeline_mode = #tpu.pipeline_mode<synchronous>, transform_indices = @transform_9, window_bounds = array<i64: 256, 128>}, {pipeline_mode = #tpu.pipeline_mode<synchronous>, transform_indices = @transform_10, window_bounds = array<i64: 1, 128>}, {pipeline_mode = #tpu.pipeline_mode<synchronous>, transform_indices = @transform_11, window_bounds = array<i64: 128, 64>}, {pipeline_mode = #tpu.pipeline_mode<synchronous>, transform_indices = @transform_12, window_bounds = array<i64: 1, 64>}, {pipeline_mode = #tpu.pipeline_mode<synchronous>, transform_indices = @transform_13, window_bounds = array<i64: 64, 32>}, {pipeline_mode = #tpu.pipeline_mode<synchronous>, transform_indices = @transform_14, window_bounds = array<i64: 1, 32>}, {pipeline_mode = #tpu.pipeline_mode<synchronous>, transform_indices = @transform_15, window_bounds = array<i64: 32, 16>}, {pipeline_mode = #tpu.pipeline_mode<synchronous>, transform_indices = @transform_16, window_bounds = array<i64: 1, 16>}, {pipeline_mode = #tpu.pipeline_mode<synchronous>, transform_indices = @transform_17, window_bounds = array<i64: 16, 4>}, {pipeline_mode = #tpu.pipeline_mode<synchronous>, transform_indices = @transform_18, window_bounds = array<i64: 1, 4>}, {pipeline_mode = #tpu.pipeline_mode<synchronous>, transform_indices = @transform_19, window_bounds = array<i64: 4, 4>}, {pipeline_mode = #tpu.pipeline_mode<synchronous>, transform_indices = @transform_20, window_bounds = array<i64: 1, 4>}, {transform_indices = @transform_21, window_bounds = array<i64: 8, 4>}]} {
    %c0 = arith.constant 0 : index
    %c0_0 = arith.constant 0 : index
    %0 = vector.load %arg1[%c0, %c0_0] : memref<8x16xf32, #tpu.memory_space<vmem>>, vector<8x16xf32>
    %1 = arith.truncf %0 : vector<8x16xf32> to vector<8x16xbf16>
    %c0_1 = arith.constant 0 : index
    %c0_2 = arith.constant 0 : index
    %2 = vector.load %arg8[%c0_1, %c0_2] : memref<16x256xbf16, #tpu.memory_space<vmem>>, vector<16x256xbf16>
    %cst = arith.constant dense<0.000000e+00> : vector<8x256xf32>
    %3 = tpu.matmul %1, %2, %cst {dimension_numbers = #tpu.dot_dimension_numbers<[1], [0], [0], [1], [0, 0, 1, 1], [], []>} : vector<8x16xbf16>, vector<16x256xbf16>, vector<8x256xf32> -> vector<8x256xf32>
    %c0_3 = arith.constant 0 : index
    %c0_4 = arith.constant 0 : index
    %4 = vector.load %arg9[%c0_3, %c0_4] : memref<1x256xf32, #tpu.memory_space<vmem>>, vector<1x256xf32>
    %5 = vector.broadcast %4 : vector<1x256xf32> to vector<8x256xf32>
    %6 = arith.addf %3, %5 : vector<8x256xf32>
    %cst_5 = arith.constant 0.000000e+00 : f32
    %7 = vector.broadcast %cst_5 : f32 to vector<8x256xf32>
    %8 = arith.maximumf %6, %7 : vector<8x256xf32>
    %c0_6 = arith.constant 0 : index
    %c0_7 = arith.constant 0 : index
    %9 = vector.load %arg2[%c0_6, %c0_7] : memref<8x256xf32, #tpu.memory_space<vmem>>, vector<8x256xf32>
    %10 = arith.mulf %8, %9 : vector<8x256xf32>
    %11 = arith.truncf %10 : vector<8x256xf32> to vector<8x256xbf16>
    %c0_8 = arith.constant 0 : index
    %c0_9 = arith.constant 0 : index
    %12 = vector.load %arg10[%c0_8, %c0_9] : memref<256x128xbf16, #tpu.memory_space<vmem>>, vector<256x128xbf16>
    %cst_10 = arith.constant dense<0.000000e+00> : vector<8x128xf32>
    %13 = tpu.matmul %11, %12, %cst_10 {dimension_numbers = #tpu.dot_dimension_numbers<[1], [0], [0], [1], [0, 0, 1, 1], [], []>} : vector<8x256xbf16>, vector<256x128xbf16>, vector<8x128xf32> -> vector<8x128xf32>
    %c0_11 = arith.constant 0 : index
    %c0_12 = arith.constant 0 : index
    %14 = vector.load %arg11[%c0_11, %c0_12] : memref<1x128xf32, #tpu.memory_space<vmem>>, vector<1x128xf32>
    %15 = vector.broadcast %14 : vector<1x128xf32> to vector<8x128xf32>
    %16 = arith.addf %13, %15 : vector<8x128xf32>
    %cst_13 = arith.constant 0.000000e+00 : f32
    %17 = vector.broadcast %cst_13 : f32 to vector<8x128xf32>
    %18 = arith.maximumf %16, %17 : vector<8x128xf32>
    %c0_14 = arith.constant 0 : index
    %c0_15 = arith.constant 0 : index
    %19 = vector.load %arg3[%c0_14, %c0_15] : memref<8x128xf32, #tpu.memory_space<vmem>>, vector<8x128xf32>
    %20 = arith.mulf %18, %19 : vector<8x128xf32>
    %21 = arith.truncf %20 : vector<8x128xf32> to vector<8x128xbf16>
    %c0_16 = arith.constant 0 : index
    %c0_17 = arith.constant 0 : index
    %22 = vector.load %arg12[%c0_16, %c0_17] : memref<128x64xbf16, #tpu.memory_space<vmem>>, vector<128x64xbf16>
    %cst_18 = arith.constant dense<0.000000e+00> : vector<8x64xf32>
    %23 = tpu.matmul %21, %22, %cst_18 {dimension_numbers = #tpu.dot_dimension_numbers<[1], [0], [0], [1], [0, 0, 1, 1], [], []>} : vector<8x128xbf16>, vector<128x64xbf16>, vector<8x64xf32> -> vector<8x64xf32>
    %c0_19 = arith.constant 0 : index
    %c0_20 = arith.constant 0 : index
    %24 = vector.load %arg13[%c0_19, %c0_20] : memref<1x64xf32, #tpu.memory_space<vmem>>, vector<1x64xf32>
    %25 = vector.broadcast %24 : vector<1x64xf32> to vector<8x64xf32>
    %26 = arith.addf %23, %25 : vector<8x64xf32>
    %cst_21 = arith.constant 0.000000e+00 : f32
    %27 = vector.broadcast %cst_21 : f32 to vector<8x64xf32>
    %28 = arith.maximumf %26, %27 : vector<8x64xf32>
    %c0_22 = arith.constant 0 : index
    %c0_23 = arith.constant 0 : index
    %29 = vector.load %arg4[%c0_22, %c0_23] : memref<8x64xf32, #tpu.memory_space<vmem>>, vector<8x64xf32>
    %30 = arith.mulf %28, %29 : vector<8x64xf32>
    %31 = arith.truncf %30 : vector<8x64xf32> to vector<8x64xbf16>
    %c0_24 = arith.constant 0 : index
    %c0_25 = arith.constant 0 : index
    %32 = vector.load %arg14[%c0_24, %c0_25] : memref<64x32xbf16, #tpu.memory_space<vmem>>, vector<64x32xbf16>
    %cst_26 = arith.constant dense<0.000000e+00> : vector<8x32xf32>
    %33 = tpu.matmul %31, %32, %cst_26 {dimension_numbers = #tpu.dot_dimension_numbers<[1], [0], [0], [1], [0, 0, 1, 1], [], []>} : vector<8x64xbf16>, vector<64x32xbf16>, vector<8x32xf32> -> vector<8x32xf32>
    %c0_27 = arith.constant 0 : index
    %c0_28 = arith.constant 0 : index
    %34 = vector.load %arg15[%c0_27, %c0_28] : memref<1x32xf32, #tpu.memory_space<vmem>>, vector<1x32xf32>
    %35 = vector.broadcast %34 : vector<1x32xf32> to vector<8x32xf32>
    %36 = arith.addf %33, %35 : vector<8x32xf32>
    %cst_29 = arith.constant 0.000000e+00 : f32
    %37 = vector.broadcast %cst_29 : f32 to vector<8x32xf32>
    %38 = arith.maximumf %36, %37 : vector<8x32xf32>
    %c0_30 = arith.constant 0 : index
    %c0_31 = arith.constant 0 : index
    %39 = vector.load %arg5[%c0_30, %c0_31] : memref<8x32xf32, #tpu.memory_space<vmem>>, vector<8x32xf32>
    %40 = arith.mulf %38, %39 : vector<8x32xf32>
    %41 = arith.truncf %40 : vector<8x32xf32> to vector<8x32xbf16>
    %c0_32 = arith.constant 0 : index
    %c0_33 = arith.constant 0 : index
    %42 = vector.load %arg16[%c0_32, %c0_33] : memref<32x16xbf16, #tpu.memory_space<vmem>>, vector<32x16xbf16>
    %cst_34 = arith.constant dense<0.000000e+00> : vector<8x16xf32>
    %43 = tpu.matmul %41, %42, %cst_34 {dimension_numbers = #tpu.dot_dimension_numbers<[1], [0], [0], [1], [0, 0, 1, 1], [], []>} : vector<8x32xbf16>, vector<32x16xbf16>, vector<8x16xf32> -> vector<8x16xf32>
    %c0_35 = arith.constant 0 : index
    %c0_36 = arith.constant 0 : index
    %44 = vector.load %arg17[%c0_35, %c0_36] : memref<1x16xf32, #tpu.memory_space<vmem>>, vector<1x16xf32>
    %45 = vector.broadcast %44 : vector<1x16xf32> to vector<8x16xf32>
    %46 = arith.addf %43, %45 : vector<8x16xf32>
    %cst_37 = arith.constant 0.000000e+00 : f32
    %47 = vector.broadcast %cst_37 : f32 to vector<8x16xf32>
    %48 = arith.maximumf %46, %47 : vector<8x16xf32>
    %c0_38 = arith.constant 0 : index
    %c0_39 = arith.constant 0 : index
    %49 = vector.load %arg6[%c0_38, %c0_39] : memref<8x16xf32, #tpu.memory_space<vmem>>, vector<8x16xf32>
    %50 = arith.mulf %48, %49 : vector<8x16xf32>
    %51 = arith.truncf %50 : vector<8x16xf32> to vector<8x16xbf16>
    %c0_40 = arith.constant 0 : index
    %c0_41 = arith.constant 0 : index
    %52 = vector.load %arg18[%c0_40, %c0_41] : memref<16x4xbf16, #tpu.memory_space<vmem>>, vector<16x4xbf16>
    %cst_42 = arith.constant dense<0.000000e+00> : vector<8x4xf32>
    %53 = tpu.matmul %51, %52, %cst_42 {dimension_numbers = #tpu.dot_dimension_numbers<[1], [0], [0], [1], [0, 0, 1, 1], [], []>} : vector<8x16xbf16>, vector<16x4xbf16>, vector<8x4xf32> -> vector<8x4xf32>
    %c0_43 = arith.constant 0 : index
    %c0_44 = arith.constant 0 : index
    %54 = vector.load %arg19[%c0_43, %c0_44] : memref<1x4xf32, #tpu.memory_space<vmem>>, vector<1x4xf32>
    %55 = vector.broadcast %54 : vector<1x4xf32> to vector<8x4xf32>
    %56 = arith.addf %53, %55 : vector<8x4xf32>
    %cst_45 = arith.constant 0.000000e+00 : f32
    %57 = vector.broadcast %cst_45 : f32 to vector<8x4xf32>
    %58 = arith.maximumf %56, %57 : vector<8x4xf32>
    %c0_46 = arith.constant 0 : index
    %c0_47 = arith.constant 0 : index
    %59 = vector.load %arg7[%c0_46, %c0_47] : memref<8x4xf32, #tpu.memory_space<vmem>>, vector<8x4xf32>
    %60 = arith.mulf %58, %59 : vector<8x4xf32>
    %61 = arith.truncf %60 : vector<8x4xf32> to vector<8x4xbf16>
    %c0_48 = arith.constant 0 : index
    %c0_49 = arith.constant 0 : index
    %62 = vector.load %arg20[%c0_48, %c0_49] : memref<4x4xbf16, #tpu.memory_space<vmem>>, vector<4x4xbf16>
    %cst_50 = arith.constant dense<0.000000e+00> : vector<8x4xf32>
    %63 = tpu.matmul %61, %62, %cst_50 {dimension_numbers = #tpu.dot_dimension_numbers<[1], [0], [0], [1], [0, 0, 1, 1], [], []>} : vector<8x4xbf16>, vector<4x4xbf16>, vector<8x4xf32> -> vector<8x4xf32>
    %c0_51 = arith.constant 0 : index
    %c0_52 = arith.constant 0 : index
    %64 = vector.load %arg21[%c0_51, %c0_52] : memref<1x4xf32, #tpu.memory_space<vmem>>, vector<1x4xf32>
    %65 = vector.broadcast %64 : vector<1x4xf32> to vector<8x4xf32>
    %66 = arith.addf %63, %65 : vector<8x4xf32>
    %c0_53 = arith.constant 0 : index
    %c0_54 = arith.constant 0 : index
    %67 = vector.load %arg22[%c0_53, %c0_54] : memref<8x4xf32, #tpu.memory_space<vmem>>, vector<8x4xf32>
    tpu.vector_store %arg22[%c0_53, %c0_54], %66 {strides = array<i32>} : memref<8x4xf32, #tpu.memory_space<vmem>>, vector<8x4xf32>,
    return
  }
  func.func @transform_0(%arg0: i32) -> (i32, i32) {
    %c0_i32 = arith.constant 0 : i32
    %c0_i32_0 = arith.constant 0 : i32
    return %arg0, %c0_i32 : i32, i32
  }
  func.func @transform_1(%arg0: i32) -> (i32, i32) {
    %c0_i32 = arith.constant 0 : i32
    %c0_i32_0 = arith.constant 0 : i32
    return %arg0, %c0_i32 : i32, i32
  }
  func.func @transform_2(%arg0: i32) -> (i32, i32) {
    %c0_i32 = arith.constant 0 : i32
    %c0_i32_0 = arith.constant 0 : i32
    return %arg0, %c0_i32 : i32, i32
  }
  func.func @transform_3(%arg0: i32) -> (i32, i32) {
    %c0_i32 = arith.constant 0 : i32
    %c0_i32_0 = arith.constant 0 : i32
    return %arg0, %c0_i32 : i32, i32
  }
  func.func @transform_4(%arg0: i32) -> (i32, i32) {
    %c0_i32 = arith.constant 0 : i32
    %c0_i32_0 = arith.constant 0 : i32
    return %arg0, %c0_i32 : i32, i32
  }
  func.func @transform_5(%arg0: i32) -> (i32, i32) {
    %c0_i32 = arith.constant 0 : i32
    %c0_i32_0 = arith.constant 0 : i32
    return %arg0, %c0_i32 : i32, i32
  }
  func.func @transform_6(%arg0: i32) -> (i32, i32) {
    %c0_i32 = arith.constant 0 : i32
    %c0_i32_0 = arith.constant 0 : i32
    return %arg0, %c0_i32 : i32, i32
  }
  func.func @transform_7(%arg0: i32) -> (i32, i32) {
    %c0_i32 = arith.constant 0 : i32
    %c0_i32_0 = arith.constant 0 : i32
    %c0_i32_1 = arith.constant 0 : i32
    return %c0_i32, %c0_i32_0 : i32, i32
  }
  func.func @transform_8(%arg0: i32) -> (i32, i32) {
    %c0_i32 = arith.constant 0 : i32
    %c0_i32_0 = arith.constant 0 : i32
    %c0_i32_1 = arith.constant 0 : i32
    return %c0_i32, %c0_i32_0 : i32, i32
  }
  func.func @transform_9(%arg0: i32) -> (i32, i32) {
    %c0_i32 = arith.constant 0 : i32
    %c0_i32_0 = arith.constant 0 : i32
    %c0_i32_1 = arith.constant 0 : i32
    return %c0_i32, %c0_i32_0 : i32, i32
  }
  func.func @transform_10(%arg0: i32) -> (i32, i32) {
    %c0_i32 = arith.constant 0 : i32
    %c0_i32_0 = arith.constant 0 : i32
    %c0_i32_1 = arith.constant 0 : i32
    return %c0_i32, %c0_i32_0 : i32, i32
  }
  func.func @transform_11(%arg0: i32) -> (i32, i32) {
    %c0_i32 = arith.constant 0 : i32
    %c0_i32_0 = arith.constant 0 : i32
    %c0_i32_1 = arith.constant 0 : i32
    return %c0_i32, %c0_i32_0 : i32, i32
  }
  func.func @transform_12(%arg0: i32) -> (i32, i32) {
    %c0_i32 = arith.constant 0 : i32
    %c0_i32_0 = arith.constant 0 : i32
    %c0_i32_1 = arith.constant 0 : i32
    return %c0_i32, %c0_i32_0 : i32, i32
  }
  func.func @transform_13(%arg0: i32) -> (i32, i32) {
    %c0_i32 = arith.constant 0 : i32
    %c0_i32_0 = arith.constant 0 : i32
    %c0_i32_1 = arith.constant 0 : i32
    return %c0_i32, %c0_i32_0 : i32, i32
  }
  func.func @transform_14(%arg0: i32) -> (i32, i32) {
    %c0_i32 = arith.constant 0 : i32
    %c0_i32_0 = arith.constant 0 : i32
    %c0_i32_1 = arith.constant 0 : i32
    return %c0_i32, %c0_i32_0 : i32, i32
  }
  func.func @transform_15(%arg0: i32) -> (i32, i32) {
    %c0_i32 = arith.constant 0 : i32
    %c0_i32_0 = arith.constant 0 : i32
    %c0_i32_1 = arith.constant 0 : i32
    return %c0_i32, %c0_i32_0 : i32, i32
  }
  func.func @transform_16(%arg0: i32) -> (i32, i32) {
    %c0_i32 = arith.constant 0 : i32
    %c0_i32_0 = arith.constant 0 : i32
    %c0_i32_1 = arith.constant 0 : i32
    return %c0_i32, %c0_i32_0 : i32, i32
  }
  func.func @transform_17(%arg0: i32) -> (i32, i32) {
    %c0_i32 = arith.constant 0 : i32
    %c0_i32_0 = arith.constant 0 : i32
    %c0_i32_1 = arith.constant 0 : i32
    return %c0_i32, %c0_i32_0 : i32, i32
  }
  func.func @transform_18(%arg0: i32) -> (i32, i32) {
    %c0_i32 = arith.constant 0 : i32
    %c0_i32_0 = arith.constant 0 : i32
    %c0_i32_1 = arith.constant 0 : i32
    return %c0_i32, %c0_i32_0 : i32, i32
  }
  func.func @transform_19(%arg0: i32) -> (i32, i32) {
    %c0_i32 = arith.constant 0 : i32
    %c0_i32_0 = arith.constant 0 : i32
    %c0_i32_1 = arith.constant 0 : i32
    return %c0_i32, %c0_i32_0 : i32, i32
  }
  func.func @transform_20(%arg0: i32) -> (i32, i32) {
    %c0_i32 = arith.constant 0 : i32
    %c0_i32_0 = arith.constant 0 : i32
    %c0_i32_1 = arith.constant 0 : i32
    return %c0_i32, %c0_i32_0 : i32, i32
  }
  func.func @transform_21(%arg0: i32) -> (i32, i32) {
    %c0_i32 = arith.constant 0 : i32
    %c0_i32_0 = arith.constant 0 : i32
    return %arg0, %c0_i32 : i32, i32
  }
}

</mosaic_0001>

<bundles_post_ra>
// kernel: tpu_custom_call.1
= control target key start
LH: loop header
LB: loop body
LE: loop exit
PB: predicated region body
PF: predicated region fallthrough
CT: control target
= control target key end

     0   :  { %s1264_s0 = inlined_call_operand.hbm [shape: f32[8,16], index: 0, kind: input, shape index: {}]   ;;  %s1265_s1 = inlined_call_operand.hbm [shape: f32[8,256], index: 1, kind: input, shape index: {}]   ;;  %s1266_s2 = inlined_call_operand.hbm [shape: f32[8,128], index: 2, kind: input, shape index: {}]   ;;  %s1267_s3 = inlined_call_operand.hbm [shape: f32[8,64], index: 3, kind: input, shape index: {}]   ;;  %s1268_s4 = inlined_call_operand.hbm [shape: f32[8,32], index: 4, kind: input, shape index: {}]   ;;  %s1269_s5 = inlined_call_operand.hbm [shape: f32[8,16], index: 5, kind: input, shape index: {}]   ;;  %s1270_s6 = inlined_call_operand.vmem [shape: f32[8,4], index: 6, kind: input, shape index: {}]   ;;  %s1271_s7 = inlined_call_operand.hbm [shape: bf16[16,256], index: 7, kind: input, shape index: {}]   ;;  %s1272_s8 = inlined_call_operand.vmem [shape: f32[1,256], index: 8, kind: input, shape index: {}]   ;;  %s1273_s9 = inlined_call_operand.vmem [shape: bf16[256,128], index: 9, kind: input, shape index: {}]   ;;  %s1274_s10 = inlined_call_operand.vmem [shape: f32[1,128], index: 10, kind: input, shape index: {}]   ;;  %s1275_s11 = inlined_call_operand.vmem [shape: bf16[128,64], index: 11, kind: input, shape index: {}]   ;;  %s1276_s12 = inlined_call_operand.vmem [shape: f32[1,64], index: 12, kind: input, shape index: {}]   ;;  %s1277_s13 = inlined_call_operand.vmem [shape: bf16[64,32], index: 13, kind: input, shape index: {}]   ;;  %s1278_s14 = inlined_call_operand.vmem [shape: f32[1,32], index: 14, kind: input, shape index: {}]   ;;  %s1279_s15 = inlined_call_operand.vmem [shape: bf16[32,16], index: 15, kind: input, shape index: {}]   ;;  %s1280_s16 = inlined_call_operand.vmem [shape: f32[1,16], index: 16, kind: input, shape index: {}]   ;;  %s1281_s17 = inlined_call_operand.vmem [shape: bf16[16,4], index: 17, kind: input, shape index: {}]   ;;  %s1282_s18 = inlined_call_operand.vmem [shape: f32[1,4], index: 18, kind: input, shape index: {}]   ;;  %s1283_s19 = inlined_call_operand.vmem [shape: bf16[4,4], index: 19, kind: input, shape index: {}]   ;;  %s1284_s20 = inlined_call_operand.vmem [shape: f32[1,4], index: 20, kind: input, shape index: {}]   ;;  %s1285_s21 = inlined_call_operand.vmem [shape: f32[8,4], index: 21, kind: output, shape index: {}]  }
   0x1   :  { %1286 = sst [smem:[#allocation17_spill]] %s1264_s0 }
   0x2   :  { %1287 = sst [smem:[#allocation18_spill]] %s1265_s1 }
   0x3   :  { %1288 = sst [smem:[#allocation19_spill]] %s1266_s2 }
   0x4   :  { %1289 = sst [smem:[#allocation20_spill]] %s1267_s3 }
   0x5   :  { %1290 = sst [smem:[#allocation21_spill]] %s1268_s4 }
   0x6   :  { %1291 = sst [smem:[#allocation22_spill]] %s1269_s5 }
   0x7   :  { %1292 = sst [smem:[#allocation23_spill]] %s1270_s6 }
   0x8   :  { %1293 = sst [smem:[#allocation24_spill]] %s1284_s20 }
   0x9   :  { %1294 = sst [smem:[#allocation25_spill]] %s1285_s21 }
   0xa   :  { %26 = vsyncpa [#allocation3], 0 }
   0xb   :  { %27 = vsyncpa [#allocation5], 0 }
   0xc   :  { %28 = vsyncpa [#allocation8], 0  ;;  %s1295_s26 = sld [smem:[#allocation18_spill]] }
  0x12   :  { %s46_s27 = sshll.u32 %s1295_s26, 4  ;;  %s47_s27 = int_to_ptr.hbm [resolvable:$true] %s46_s27 }
  0x13   :  { %29 = vsyncpa [#allocation11], 0  ;;  %s998_s3 = smov [#allocation4]   ;;  %s1296_s4 = sld [smem:[#allocation20_spill]] }
  0x14   :  { %s48_s28 = sshll.u32 %s998_s3, 4  ;;  %s999_s5 = smov [#allocation7]   ;;  %s49_s28 = int_to_ptr.vmem [resolvable:$true] %s48_s28 }
  0x15   :  { %51 = dma.hbm_to_vmem [thread:$0]  %s47_s27, 256, %s49_s28, [#allocation5]  }
  0x16   :  { %s70_s22 = sshll.u32 %s999_s5, 4  ;;  %s1297_s24 = sld [smem:[#allocation22_spill]]  ;;  %s71_s22 = int_to_ptr.vmem [resolvable:$true] %s70_s22 }
  0x17   :  { %s1298_s26 = sld [smem:[#allocation17_spill]]  ;;  %s1000_s20 = smov [#allocation10]  }
  0x18   :  { %s92_s6 = sshll.u32 %s1000_s20, 4  ;;  %s1001_s27 = smov [#allocation2]   ;;  %s93_s6 = int_to_ptr.vmem [resolvable:$true] %s92_s6 }
  0x19   :  { %s68_s30 = sshll.u32 %s1296_s4, 4  ;;  %s37_s28 = sshll.u32 %s1001_s27, 4  ;;  %s69_s30 = int_to_ptr.hbm [resolvable:$true] %s68_s30  ;;  %s38_s28 = int_to_ptr.vmem [resolvable:$true] %s37_s28 }
  0x1a   :  { %73 = dma.hbm_to_vmem [thread:$0]  %s69_s30, 128, %s71_s22, [#allocation8]  }
  0x1b   :  { %s1299_s4 = sld [smem:[#allocation19_spill]]  ;;  %s1003_s20 = smov [#allocation9]  }
  0x1c   :  { %s90_s21 = sshll.u32 %s1297_s24, 4  ;;  %s1300_s22 = sld [smem:[#allocation21_spill]]  ;;  %s91_s21 = int_to_ptr.hbm [resolvable:$true] %s90_s21 }
  0x1d   :  { %s35_s3 = sshll.u32 %s1298_s26, 4  ;;  %s1002_s24 = smov [#allocation6]   ;;  %s36_s3 = int_to_ptr.hbm [resolvable:$true] %s35_s3 }
  0x1e   :  { %95 = dma.hbm_to_vmem [thread:$0]  %s91_s21, 128, %s93_s6, [#allocation11]  }
  0x1f   :  { %40 = dma.hbm_to_vmem [thread:$0]  %s36_s3, 128, %s38_s28, [#allocation3]  }
  0x20   :  { %s59_s2 = sshll.u32 %s1002_s24, 4  ;;  %s81_s6 = sshll.u32 %s1003_s20, 4  ;;  %s60_s2 = int_to_ptr.vmem [resolvable:$true] %s59_s2  ;;  %s82_s6 = int_to_ptr.vmem [resolvable:$true] %s81_s6 }
  0x21   :  { %s57_s5 = sshll.u32 %s1299_s4, 4  ;;  %s102_s26 = sshll.u32 %s1271_s7, 4  ;;  %s58_s5 = int_to_ptr.hbm [resolvable:$true] %s57_s5  ;;  %s103_s26 = int_to_ptr.hbm [resolvable:$true] %s102_s26 }
  0x22   :  { %s79_s1 = sshll.u32 %s1300_s22, 4  ;;  %s1004_s27 = smov [#allocation12]   ;;  %s80_s1 = int_to_ptr.hbm [resolvable:$true] %s79_s1 }
  0x23   :  { %62 = dma.hbm_to_vmem [thread:$0]  %s58_s5, 128, %s60_s2, [#allocation5]  }
  0x24   :  { %84 = dma.hbm_to_vmem [thread:$0]  %s80_s1, 128, %s82_s6, [#allocation8]  }
  0x25   :  { %s104_s3 = sshll.u32 %s1004_s27, 4  ;;  %s1005_s28 = smov 128   ;;  %s105_s3 = int_to_ptr.vmem [resolvable:$true] %s104_s3 }
  0x26   :  { %s1006_s29 = smov 8  }
  0x27   :  { %110 = dma.hbm_to_vmem [thread:$0]  %s103_s26, 256, %s105_s3, [#allocation11], %s1005_s28, %s1005_s28, %s1006_s29  }
  0x28   :  { %990 = dma.done.wait [#allocation3], 128  }
  0x29   :  { %991 = vsyncadd [#allocation3], 4294967168 }
  0x2a   :  { %992 = dma.done.wait [#allocation5], 384  }
  0x2b   :  { %993 = vsyncadd [#allocation5], 4294966912 }
  0x2c   :  { %994 = dma.done.wait [#allocation8], 256  }
  0x2d   :  { %995 = vsyncadd [#allocation8], 4294967040 }
  0x2e   :  { %996 = dma.done.wait [#allocation11], 384  }
  0x2f   :  { %997 = vsyncadd [#allocation11], 4294966912  ;;  %v638_v0 = vld [vmem:[#allocation12] sm:$0xf]  ;;  %v775_v1 = vld [vmem:[#allocation12 + $0x4] sm:$0xf0] }
  0x30   :  { %v774_v2 = vld [vmem:[#allocation12 + $0x4] sm:$0xf]  ;;  %v639_v3 = vor.u32 %v775_v1, %v638_v0  ;;  %v640_v4 = vld [vmem:[#allocation12 + $0x8] sm:$0xf0]  ;;  %vm186_vm0 = vcmask 130048   ;;  %v782_v10 = vld [vmem:[%s1273_s9 + $0x30] sm:$0xff] }
  0x31   :  { %v166_v5 = vld [vmem:[#allocation2] sm:$0xff]  ;;  %v783_v6 = vld [vmem:[%s1273_s9 + $0x38] sm:$0xff]  ;;  %v643_v7 = vor.u32 %v774_v2, %v640_v4  ;;  %v790_v11 = vld [vmem:[%s1273_s9 + $0x70] sm:$0xff]  ;;  %vm507_vm1 = vcmask 523264   ;;  %vm548_vm2 = vcmask 261120   ;;  %vm610_vm3 = vcmask 1041408  }
  0x32   :  { %v167_v8 = vpack.c.bf16 %v166_v5, %v166_v5  ;;  %v791_v9 = vld [vmem:[%s1273_s9 + $0x78] sm:$0xff]  ;;  %197 = vmatpush.bf16.msra.mxu0 %v639_v3  ;;  %356 = vmatpush.bf16.msra.mxu2 %v783_v6  ;;  %v781_v12 = vld [vmem:[%s1273_s9 + $0x28] sm:$0xff]  ;;  %v780_v14 = vld [vmem:[%s1273_s9 + $0x20] sm:$0xff]  ;;  %s1301_s2 = sld [smem:[#allocation23_spill]]  ;;  %vm606_vm4 = vcmask 31744  }
  0x33   :  { %210 = vmatpush.bf16.msra.mxu1 %v643_v7  ;;  %369 = vmatpush.bf16.msra.mxu3 %v791_v9  ;;  %v789_v13 = vld [vmem:[%s1273_s9 + $0x68] sm:$0xff]  ;;  %v788_v15 = vld [vmem:[%s1273_s9 + $0x60] sm:$0xff]  ;;  %v779_v16 = vld [vmem:[%s1273_s9 + $0x18] sm:$0xff]  ;;  %s1302_s6 = sld [smem:[#allocation24_spill]] }
  0x34   :  { %v787_v17 = vld [vmem:[%s1273_s9 + $0x58] sm:$0xff]  ;;  %v778_v18 = vld [vmem:[%s1273_s9 + $0x10] sm:$0xff]  ;;  %v777_v20 = vld [vmem:[%s1273_s9 + $0x8] sm:$0xff]  ;;  %s1303_s25 = sld [smem:[#allocation25_spill]] }
  0x35   :  { %644 = vmatmul.msk.bf16.vlgmr.msra.gmra.mxu0 %vm186_vm0, %v167_v8  ;;  %v786_v19 = vld [vmem:[%s1273_s9 + $0x50] sm:$0xff]  ;;  %v785_v21 = vld [vmem:[%s1273_s9 + $0x48] sm:$0xff]  ;;  %v776_v22 = vld [vmem:[%s1273_s9] sm:$0xff] }
  0x36   :  { %645 = vmatmul.msk.bf16.vlgmr.msra.gmra.mxu1 %vm186_vm0, %v167_v8  ;;  %357 = vmatpush.bf16.msra.mxu2 %v782_v10  ;;  %v784_v23 = vld [vmem:[%s1273_s9 + $0x40] sm:$0xff]  ;;  %v799_v24 = vld [vmem:[%s1275_s11 + $0x38] sm:$0xff]  ;;  %v798_v25 = vld [vmem:[%s1275_s11 + $0x30] sm:$0xff] }
  0x37   :  { %370 = vmatpush.bf16.msra.mxu3 %v790_v11  ;;  %454 = vmatpush.bf16.msrb.mxu0 %v799_v24  ;;  %v797_v26 = vld [vmem:[%s1275_s11 + $0x28] sm:$0xff]  ;;  %v796_v27 = vld [vmem:[%s1275_s11 + $0x20] sm:$0xff]  ;;  %v795_v28 = vld [vmem:[%s1275_s11 + $0x18] sm:$0xff] }
  0x38   :  { %v170_v29 = vld [vmem:[%s1272_s8] sm:$0x3]  ;;  %v218_v36 = vld [vmem:[#allocation4] sm:$0xff]  ;;  %v219_v38 = vld [vmem:[#allocation4 + $0x8] sm:$0xff] }
  0x39   :  { %v172_v30 = vperm.slane %v170_v29, 0  ;;  %v173_v31 = vperm.slane %v170_v29, 1  ;;  %v794_v46 = vld [vmem:[%s1275_s11 + $0x10] sm:$0xff]  ;;  %v793_v47 = vld [vmem:[%s1275_s11 + $0x8] sm:$0xff]  ;;  %v792_v48 = vld [vmem:[%s1275_s11] sm:$0xff] }
  0x3a   :  { %358 = vmatpush.bf16.msra.mxu2 %v781_v12  ;;  %v803_v49 = vld [vmem:[%s1277_s13 + $0x18] sm:$0xff]  ;;  %v802_v50 = vld [vmem:[%s1277_s13 + $0x10] sm:$0xff]  ;;  %v816_v51 = vld [vmem:[%s1274_s10] ss:$0 sm:$0xff] }
  0x3b   :  { %371 = vmatpush.bf16.msra.mxu3 %v789_v13  ;;  %455 = vmatpush.bf16.msrb.mxu0 %v798_v25  ;;  %v383_v56 = vld [vmem:[#allocation6] sm:$0xff]  ;;  %v801_v62 = vld [vmem:[%s1277_s13 + $0x8] sm:$0xff]  ;;  %v800_v63 = vld [vmem:[%s1277_s13] sm:$0xff] }
  0x3c   :  { %515 = vmatpush.bf16.msrb.mxu1 %v803_v49  ;;  %v805_v0 = vld [vmem:[%s1279_s15 + $0x8] sm:$0xff]  ;;  %v817_v1 = vld [vmem:[%s1276_s12] ss:$0 sm:$0xff]  ;;  %v566_v24 = vld [vmem:[#allocation10] sm:$0xff] }
  0x3d   :  { %v468_v4 = vld [vmem:[#allocation7] sm:$0xff] }
  0x3e   :  { %359 = vmatpush.bf16.msra.mxu2 %v780_v14  ;;  %v804_v9 = vld [vmem:[%s1279_s15] sm:$0xff]  ;;  %v525_v14 = vld [vmem:[#allocation9] sm:$0xff] }
  0x3f   :  { %372 = vmatpush.bf16.msra.mxu3 %v788_v15  ;;  %456 = vmatpush.bf16.msrb.mxu0 %v797_v26  ;;  %v806_v10 = vld [vmem:[%s1281_s17] sm:$0xff] }
  0x40   :  { %516 = vmatpush.bf16.msrb.mxu1 %v802_v50  ;;  %v818_v11 = vld [vmem:[%s1278_s14] ss:$0 sm:$0xff] }
  0x41   :  { %v820_v29 = vld [vmem:[%s1282_s18] ss:$0 sm:$0xff] }
  0x42   :  { %360 = vmatpush.bf16.msra.mxu2 %v779_v16 }
  0x43   :  { %373 = vmatpush.bf16.msra.mxu3 %v787_v17  ;;  %457 = vmatpush.bf16.msrb.mxu0 %v796_v27 }
  0x44   :  { %517 = vmatpush.bf16.msrb.mxu1 %v801_v62 }
  0x46   :  { %361 = vmatpush.bf16.msra.mxu2 %v778_v18 }
  0x47   :  { %374 = vmatpush.bf16.msra.mxu3 %v786_v19  ;;  %458 = vmatpush.bf16.msrb.mxu0 %v795_v28  ;;  %v601_v19 = vld [vmem:[%s1283_s19] sm:$0x3] }
  0x48   :  { %518 = vmatpush.bf16.msrb.mxu1 %v800_v63 }
  0x4a   :  { %362 = vmatpush.bf16.msra.mxu2 %v777_v20  ;;  %v612_v20 = vsel %vm610_vm3, %v601_v19, 0 }
  0x4b   :  { %375 = vmatpush.bf16.msra.mxu3 %v785_v21  ;;  %459 = vmatpush.bf16.msrb.mxu0 %v794_v46  ;;  %v819_v21 = vld [vmem:[%s1280_s16] ss:$0 sm:$0xff] }
  0x4c   :  { %558 = vmatpush.bf16.msra.mxu1 %v805_v0 }
  0x4e   :  { %363 = vmatpush.bf16.msra.mxu2 %v776_v22 }
  0x4f   :  { %376 = vmatpush.bf16.msra.mxu3 %v784_v23  ;;  %460 = vmatpush.bf16.msrb.mxu0 %v793_v47 }
  0x50   :  { %559 = vmatpush.bf16.msra.mxu1 %v804_v9 }
  0x52   :  { %591 = vmatpush.bf16.msrb.mxu2 %v806_v10 }
  0x53   :  { %461 = vmatpush.bf16.msrb.mxu0 %v792_v48  ;;  %621 = vmatpush.bf16.msrb.mxu3 %v612_v20 }
  0xb2   :  { %v199_v32 = vpop.f32.mrf.mxu0 }
  0xb3   :  { %v200_v33 = vadd.f32 %v199_v32, %v172_v30  ;;  %v212_v34 = vpop.f32.mrf.mxu1  ;;  %v598_v32 = vld [vmem:[%s1301_s2] sm:$0xff] }
  0xb4   :  { %v213_v35 = vadd.f32 %v212_v34, %v173_v31 }
  0xb5   :  { %v216_v37 = vmax.f32 %v200_v33, 0.0 }
  0xb6   :  { %v217_v39 = vmax.f32 %v213_v35, 0.0 }
  0xb7   :  { %v220_v40 = vmul.f32 %v218_v36, %v216_v37  ;;  %v821_v37 = vld [vmem:[%s1302_s6] ss:$0 sm:$0xff] }
  0xb8   :  { %v221_v41 = vmul.f32 %v219_v38, %v217_v39 }
  0xb9   :  { %v222_v42 = vpack.c.bf16 %v220_v40, %v220_v40 }
  0xba   :  { %v201_v43 = vpop.f32.mrf.mxu0  ;;  %v223_v44 = vpack.c.bf16 %v221_v41, %v221_v41 }
  0xbb   :  { %v214_v45 = vpop.f32.mrf.mxu1  ;;  %364 = vmatmul.bf16.vlgmr.msra.gmra.mxu2 %v222_v42 }
  0xbc   :  { %377 = vmatmul.bf16.vlgmr.msra.gmra.mxu3 %v223_v44 }
 0x13e   :  { %v365_v52 = vpop.f32.mrf.mxu2 }
 0x13f   :  { %v366_v53 = vadd.f32 %v816_v51, %v365_v52  ;;  %v378_v54 = vpop.f32.mrf.mxu3 }
 0x141   :  { %v379_v55 = vadd.f32 %v378_v54, %v366_v53 }
 0x143   :  { %v382_v57 = vmax.f32 %v379_v55, 0.0 }
 0x145   :  { %v384_v58 = vmul.f32 %v383_v56, %v382_v57 }
 0x146   :  { %v367_v59 = vpop.f32.mrf.mxu2 }
 0x147   :  { %v385_v60 = vpack.c.bf16 %v384_v58, %v384_v58  ;;  %v380_v61 = vpop.f32.mrf.mxu3 }
 0x149   :  { %462 = vmatmul.bf16.vlgmr.msrb.gmra.mxu0 %v385_v60 }
 0x1c6   :  { %v463_v2 = vpop.f32.mrf.mxu0 }
 0x1c7   :  { %v464_v3 = vadd.f32 %v817_v1, %v463_v2 }
 0x1c9   :  { %v467_v5 = vmax.f32 %v464_v3, 0.0 }
 0x1cb   :  { %v469_v6 = vmul.f32 %v468_v4, %v467_v5 }
 0x1cd   :  { %v470_v7 = vpack.c.bf16 %v469_v6, %v469_v6 }
 0x1ce   :  { %v465_v8 = vpop.f32.mrf.mxu0 }
 0x1cf   :  { %758 = vmatmul.msk.bf16.vlgmr.msrb.gmra.mxu1 %vm507_vm1, %v470_v7 }
 0x24c   :  { %v520_v12 = vpop.f32.mrf.mxu1 }
 0x24d   :  { %v521_v13 = vadd.f32 %v818_v11, %v520_v12 }
 0x24f   :  { %v524_v15 = vmax.f32 %v521_v13, 0.0 }
 0x251   :  { %v526_v16 = vmul.f32 %v525_v14, %v524_v15 }
 0x253   :  { %v527_v17 = vpack.c.bf16 %v526_v16, %v526_v16 }
 0x254   :  { %v522_v18 = vpop.f32.mrf.mxu1 }
 0x255   :  { %767 = vmatmul.msk.bf16.vlgmr.msra.gmra.mxu1 %vm548_vm2, %v527_v17 }
 0x2d2   :  { %v561_v22 = vpop.f32.mrf.mxu1 }
 0x2d3   :  { %v562_v23 = vadd.f32 %v819_v21, %v561_v22 }
 0x2d5   :  { %v565_v25 = vmax.f32 %v562_v23, 0.0 }
 0x2d7   :  { %v567_v26 = vmul.f32 %v566_v24, %v565_v25 }
 0x2d9   :  { %v568_v27 = vpack.c.bf16 %v567_v26, %v567_v26 }
 0x2da   :  { %v563_v28 = vpop.f32.mrf.mxu1 }
 0x2db   :  { %772 = vmatmul.msk.bf16.vlgmr.msrb.gmra.mxu2 %vm186_vm0, %v568_v27 }
 0x35e   :  { %v593_v30 = vpop.f32.mrf.mxu2 }
 0x35f   :  { %v594_v31 = vadd.f32 %v820_v29, %v593_v30 }
 0x361   :  { %v597_v33 = vmax.f32 %v594_v31, 0.0 }
 0x363   :  { %v599_v34 = vmul.f32 %v598_v32, %v597_v33 }
 0x365   :  { %v600_v35 = vpack.c.bf16 %v599_v34, %v599_v34 }
 0x366   :  { %v595_v36 = vpop.f32.mrf.mxu2 }
 0x367   :  { %773 = vmatmul.msk.bf16.vlgmr.msrb.gmra.mxu3 %vm606_vm4, %v600_v35 }
 0x3ea   :  { %v623_v38 = vpop.f32.mrf.mxu3 }
 0x3eb   :  { %v624_v39 = vadd.f32 %v821_v37, %v623_v38 }
 0x3ed   :  { %627 = vst.msk [vmem:[%s1303_s25] sm:$0xff] %vm606_vm4, %v624_v39 }
 0x3f2   :  { %v625_v40 = vpop.f32.mrf.mxu3 }
 0x3f3   :  { %632 = vsyncpa [#allocation3], 1 }
 0x3f4   :  { %633 = vsyncpa [#allocation5], 1 }
 0x3f5   :  { %634 = vsyncpa [#allocation8], 1 }
 0x3f6   :  { %635 = vsyncpa [#allocation11], 1 }

</bundles_post_ra>
